<compile_context>
chip_gen: v6e
topology: v6e:2x2x1
jax: 0.10.0
libtpu: 0.0.40
codegen_flags: <defaults>
</compile_context>

<pallas_src>
import jax
import jax.numpy as jnp
from jax import lax
from jax.experimental import pallas as pl
from jax.experimental.pallas import tpu as pltpu  # noqa: F401  (kept for CompilerParams at scale)

# Small synthetic configuration consistent with the module:
#   raw class scores have 91 entries; the last one is dropped (":-1") so the
#   projection MLP input dim (const.backbone.N_CLASSES) is 90.
#   PROJECTION must equal the feature dim (elementwise multiply in forward).
B = 2            # number of predictions (images)
N = 8            # objects per prediction ("n_pairs" in the torch code)
C_FULL = 91      # raw class-score length
C = C_FULL - 1   # const.backbone.N_CLASSES
HIDDEN = 32      # const.repn.HIDDEN
PROJ = 128       # const.repn.PROJECTION == feature dim


# --------------------------------------------------------------------------
# Fused kernel: projection MLP for all B*N objects + per-image pairwise score
# matrix + sigmoid + triangular / NaN epilogue, in ONE launch with no grid.
# --------------------------------------------------------------------------
def repn_fused_kernel(scores_ref, feats_ref, w1_ref, b1_ref, w2_ref, b2_ref,
                      out_ref):
    # ---- Stage A: fused subject/object projections over all B*N rows. ------
    s = scores_ref[...]                     # [B*N, C_FULL] (zero W1 row == ':-1')
    f = feats_ref[...]                      # [B*N, PROJ]

    h = jnp.maximum(
        jnp.dot(s, w1_ref[...], preferred_element_type=jnp.float32) + b1_ref[...],
        0.0)                                # [B*N, 2*HIDDEN]
    uv = (jnp.dot(h, w2_ref[...], preferred_element_type=jnp.float32)
          + b2_ref[...])                    # [B*N, 2*PROJ] = [ subj | obj ]

    u = uv[:, :PROJ] * f                    # subject-side vectors, [B*N, PROJ]
    v = uv[:, PROJ:] * f                    # object-side vectors,  [B*N, PROJ]

    # ---- Epilogue masks generated in-kernel (iota + select on idle VALU). --
    row = lax.broadcasted_iota(jnp.int32, (N, N), 0)
    col = lax.broadcasted_iota(jnp.int32, (N, N), 1)
    upper = row < col                        # strict upper triangle (subj < obj)
    diag = row == col

    # ---- Stage B: per-image pairwise dot + sigmoid + epilogue. -------------
    # Static unrolled loop over the B=2 images: everything is already resident
    # in vregs/VMEM, so this beats a 2-step grid (~0.35 us/step overhead).
    for b in range(B):
        u_b = u[b * N:(b + 1) * N, :]        # [N, PROJ]
        v_b = v[b * N:(b + 1) * N, :]        # [N, PROJ]
        # sm[i, j] = <u_i, v_j>; at N=8 the implied XLU transpose of v_b is
        # negligible (revisit layout only if N scales into the hundreds).
        sm = lax.dot_general(u_b, v_b, (((1,), (1,)), ((), ())),
                             preferred_element_type=jnp.float32)   # [N, N]
        sig = 1.0 / (1.0 + jnp.exp(-sm))     # exact sigmoid (ranking parity)
        # subj < obj -> sigmoid(score); lower triangle -> sigmoid(0) = 0.5;
        # diagonal -> NaN (matches torch fill_diagonal_(nan)).
        out_ref[b] = jnp.where(diag, jnp.nan, jnp.where(upper, sig, 0.5))


# --------------------------------------------------------------------------
# One-time weight packing (outside the per-call path).
# --------------------------------------------------------------------------
def pack_params(params):
    """Fuse subject/object branches and fold the ':-1' logit drop into W1."""
    w1s, b1s, w2s, b2s, w1o, b1o, w2o, b2o = (
        jnp.asarray(p, jnp.float32) for p in params)
    w1 = jnp.zeros((C_FULL, 2 * HIDDEN), jnp.float32)
    w1 = w1.at[:C, :HIDDEN].set(w1s)         # last input row stays zero (':-1')
    w1 = w1.at[:C, HIDDEN:].set(w1o)
    b1 = jnp.concatenate([b1s, b1o], axis=-1)              # [1, 2*HIDDEN]
    w2 = jnp.zeros((2 * HIDDEN, 2 * PROJ), jnp.float32)    # block-diagonal
    w2 = w2.at[:HIDDEN, :PROJ].set(w2s)
    w2 = w2.at[HIDDEN:, PROJ:].set(w2o)
    b2 = jnp.concatenate([b2s, b2o], axis=-1)               # [1, 2*PROJ]
    return w1, b1, w2, b2


@jax.jit
def repn_score_matrix(scores, feats, w1, b1, w2, b2):
    """scores: [B, N, 91] raw class logits, feats: [B, N, PROJ]."""
    b_, n_, _ = scores.shape
    # Free, contiguous reshapes — no class-axis slice, no extra HBM copy.
    scores_flat = scores.reshape(b_ * n_, C_FULL)
    feats_flat = feats.reshape(b_ * n_, PROJ)
    return pl.pallas_call(
        repn_fused_kernel,
        out_shape=jax.ShapeDtypeStruct((b_, n_, n_), jnp.float32),
    )(scores_flat, feats_flat, w1, b1, w2, b2)


def repn_score_matrix_ref(scores, feats, params):
    """Pure-JAX reference of the same math (for validation)."""
    (w1s, b1s, w2s, b2s, w1o, b1o, w2o, b2o) = params
    s = scores[:, :, :C]
    u = (jnp.maximum(s @ w1s + b1s, 0.0) @ w2s + b2s) * feats
    v = (jnp.maximum(s @ w1o + b1o, 0.0) @ w2o + b2o) * feats
    sm = jnp.einsum("bip,bjp->bij", u, v)
    sig = jax.nn.sigmoid(sm)
    row = jnp.arange(N)[:, None]
    col = jnp.arange(N)[None, :]
    out = jnp.where(row < col, sig, 0.5)
    out = jnp.where(row == col, jnp.nan, out)
    return out.astype(jnp.float32)


if __name__ == "__main__":
    key = jax.random.PRNGKey(0)
    k_scores, k_feats, k_params = jax.random.split(key, 3)

    scores = jax.random.uniform(k_scores, (B, N, C_FULL), jnp.float32)
    feats = jax.random.normal(k_feats, (B, N, PROJ), jnp.float32) * 0.1

    pk = jax.random.split(k_params, 8)

    def lin_init(k, fan_in, shape):
        bound = 1.0 / jnp.sqrt(jnp.float32(fan_in))
        return jax.random.uniform(k, shape, jnp.float32, -bound, bound)

    params = (
        lin_init(pk[0], C, (C, HIDDEN)),          lin_init(pk[1], C, (1, HIDDEN)),
        lin_init(pk[2], HIDDEN, (HIDDEN, PROJ)),  lin_init(pk[3], HIDDEN, (1, PROJ)),
        lin_init(pk[4], C, (C, HIDDEN)),          lin_init(pk[5], C, (1, HIDDEN)),
        lin_init(pk[6], HIDDEN, (HIDDEN, PROJ)),  lin_init(pk[7], HIDDEN, (1, PROJ)),
    )

    # Pack once (not per call); only the fused kernel dispatch remains per call.
    w1, b1, w2, b2 = pack_params(params)
    w1, b1, w2, b2 = jax.block_until_ready((w1, b1, w2, b2))

    out = repn_score_matrix(scores, feats, w1, b1, w2, b2)
    jax.block_until_ready(out)

    ref = repn_score_matrix_ref(scores, feats, params)
    assert out.shape == (B, N, N)
    assert bool(jnp.allclose(out, ref, rtol=1e-4, atol=1e-5, equal_nan=True))

    print("KERNEL_OK")
</pallas_src>

<mosaic_0001>
module attributes {stable_mosaic.version = 11 : i64} {
  func.func @repn_fused_kernel(%arg0: memref<16x91xf32, #tpu.memory_space<vmem>>, %arg1: memref<16x128xf32, #tpu.memory_space<vmem>>, %arg2: memref<91x64xf32, #tpu.memory_space<vmem>>, %arg3: memref<1x64xf32, #tpu.memory_space<vmem>>, %arg4: memref<64x256xf32, #tpu.memory_space<vmem>>, %arg5: memref<1x256xf32, #tpu.memory_space<vmem>>, %arg6: memref<2x8x8xf32, #tpu.memory_space<vmem>>) attributes {dimension_semantics = [], scalar_prefetch = 0 : i64, scratch_operands = 0 : i64, tpu.core_type = #tpu.core_type<tc>} {
    %c0 = arith.constant 0 : index
    %c0_0 = arith.constant 0 : index
    %0 = vector.load %arg0[%c0, %c0_0] : memref<16x91xf32, #tpu.memory_space<vmem>>, vector<16x91xf32>
    %c0_1 = arith.constant 0 : index
    %c0_2 = arith.constant 0 : index
    %1 = vector.load %arg1[%c0_1, %c0_2] : memref<16x128xf32, #tpu.memory_space<vmem>>, vector<16x128xf32>
    %c0_3 = arith.constant 0 : index
    %c0_4 = arith.constant 0 : index
    %2 = vector.load %arg2[%c0_3, %c0_4] : memref<91x64xf32, #tpu.memory_space<vmem>>, vector<91x64xf32>
    %cst = arith.constant dense<0.000000e+00> : vector<16x64xf32>
    %3 = tpu.matmul %0, %2, %cst {dimension_numbers = #tpu.dot_dimension_numbers<[1], [0], [0], [1], [0, 0, 1, 1], [], []>} : vector<16x91xf32>, vector<91x64xf32>, vector<16x64xf32> -> vector<16x64xf32>
    %c0_5 = arith.constant 0 : index
    %c0_6 = arith.constant 0 : index
    %4 = vector.load %arg3[%c0_5, %c0_6] : memref<1x64xf32, #tpu.memory_space<vmem>>, vector<1x64xf32>
    %5 = vector.broadcast %4 : vector<1x64xf32> to vector<16x64xf32>
    %6 = arith.addf %3, %5 : vector<16x64xf32>
    %cst_7 = arith.constant 0.000000e+00 : f32
    %7 = vector.broadcast %cst_7 : f32 to vector<16x64xf32>
    %8 = arith.maximumf %6, %7 : vector<16x64xf32>
    %c0_8 = arith.constant 0 : index
    %c0_9 = arith.constant 0 : index
    %9 = vector.load %arg4[%c0_8, %c0_9] : memref<64x256xf32, #tpu.memory_space<vmem>>, vector<64x256xf32>
    %cst_10 = arith.constant dense<0.000000e+00> : vector<16x256xf32>
    %10 = tpu.matmul %8, %9, %cst_10 {dimension_numbers = #tpu.dot_dimension_numbers<[1], [0], [0], [1], [0, 0, 1, 1], [], []>} : vector<16x64xf32>, vector<64x256xf32>, vector<16x256xf32> -> vector<16x256xf32>
    %c0_11 = arith.constant 0 : index
    %c0_12 = arith.constant 0 : index
    %11 = vector.load %arg5[%c0_11, %c0_12] : memref<1x256xf32, #tpu.memory_space<vmem>>, vector<1x256xf32>
    %12 = vector.broadcast %11 : vector<1x256xf32> to vector<16x256xf32>
    %13 = arith.addf %10, %12 : vector<16x256xf32>
    %14 = vector.extract_strided_slice %13 {offsets = [0, 0], sizes = [16, 128], strides = [1, 1]} : vector<16x256xf32> to vector<16x128xf32>
    %15 = arith.mulf %14, %1 : vector<16x128xf32>
    %16 = vector.extract_strided_slice %13 {offsets = [0, 128], sizes = [16, 128], strides = [1, 1]} : vector<16x256xf32> to vector<16x128xf32>
    %17 = arith.mulf %16, %1 : vector<16x128xf32>
    %18 = tpu.iota {dimensions = array<i32: 0>} : vector<8x8xi32>
    %19 = tpu.iota {dimensions = array<i32: 1>} : vector<8x8xi32>
    %20 = arith.cmpi slt, %18, %19 : vector<8x8xi32>
    %21 = arith.cmpi eq, %18, %19 : vector<8x8xi32>
    %22 = vector.extract_strided_slice %15 {offsets = [0, 0], sizes = [8, 128], strides = [1, 1]} : vector<16x128xf32> to vector<8x128xf32>
    %23 = vector.extract_strided_slice %17 {offsets = [0, 0], sizes = [8, 128], strides = [1, 1]} : vector<16x128xf32> to vector<8x128xf32>
    %cst_13 = arith.constant dense<0.000000e+00> : vector<8x8xf32>
    %24 = tpu.matmul %22, %23, %cst_13 {dimension_numbers = #tpu.dot_dimension_numbers<[1], [1], [0], [0], [0, 0, 1, 0], [], []>} : vector<8x128xf32>, vector<8x128xf32>, vector<8x8xf32> -> vector<8x8xf32>
    %cst_14 = arith.constant 0.000000e+00 : f32
    %25 = vector.broadcast %cst_14 : f32 to vector<8x8xf32>
    %26 = arith.subf %25, %24 : vector<8x8xf32>
    %27 = math.exp %26 : vector<8x8xf32>
    %cst_15 = arith.constant 1.000000e+00 : f32
    %28 = vector.broadcast %cst_15 : f32 to vector<8x8xf32>
    %29 = arith.addf %28, %27 : vector<8x8xf32>
    %cst_16 = arith.constant 1.000000e+00 : f32
    %30 = vector.broadcast %cst_16 : f32 to vector<8x8xf32>
    %31 = arith.divf %30, %29 : vector<8x8xf32>
    %cst_17 = arith.constant 5.000000e-01 : f32
    %32 = vector.broadcast %cst_17 : f32 to vector<8x8xf32>
    %33 = arith.select %20, %31, %32 : vector<8x8xi1>, vector<8x8xf32>
    %cst_18 = arith.constant 0x7FC00000 : f32
    %34 = vector.broadcast %cst_18 : f32 to vector<8x8xf32>
    %35 = arith.select %21, %34, %33 : vector<8x8xi1>, vector<8x8xf32>
    %c0_19 = arith.constant 0 : index
    %c0_20 = arith.constant 0 : index
    %c0_21 = arith.constant 0 : index
    %36 = vector.load %arg6[%c0_19, %c0_20, %c0_21] : memref<2x8x8xf32, #tpu.memory_space<vmem>>, vector<1x8x8xf32>
    %37 = vector.shape_cast %36 : vector<1x8x8xf32> to vector<8x8xf32>
    %38 = vector.shape_cast %35 : vector<8x8xf32> to vector<1x8x8xf32>
    tpu.vector_store %arg6[%c0_19, %c0_20, %c0_21], %38 {strides = array<i32>} : memref<2x8x8xf32, #tpu.memory_space<vmem>>, vector<1x8x8xf32>,
    %39 = vector.extract_strided_slice %15 {offsets = [8, 0], sizes = [8, 128], strides = [1, 1]} : vector<16x128xf32> to vector<8x128xf32>
    %40 = vector.extract_strided_slice %17 {offsets = [8, 0], sizes = [8, 128], strides = [1, 1]} : vector<16x128xf32> to vector<8x128xf32>
    %cst_22 = arith.constant dense<0.000000e+00> : vector<8x8xf32>
    %41 = tpu.matmul %39, %40, %cst_22 {dimension_numbers = #tpu.dot_dimension_numbers<[1], [1], [0], [0], [0, 0, 1, 0], [], []>} : vector<8x128xf32>, vector<8x128xf32>, vector<8x8xf32> -> vector<8x8xf32>
    %cst_23 = arith.constant 0.000000e+00 : f32
    %42 = vector.broadcast %cst_23 : f32 to vector<8x8xf32>
    %43 = arith.subf %42, %41 : vector<8x8xf32>
    %44 = math.exp %43 : vector<8x8xf32>
    %cst_24 = arith.constant 1.000000e+00 : f32
    %45 = vector.broadcast %cst_24 : f32 to vector<8x8xf32>
    %46 = arith.addf %45, %44 : vector<8x8xf32>
    %cst_25 = arith.constant 1.000000e+00 : f32
    %47 = vector.broadcast %cst_25 : f32 to vector<8x8xf32>
    %48 = arith.divf %47, %46 : vector<8x8xf32>
    %cst_26 = arith.constant 5.000000e-01 : f32
    %49 = vector.broadcast %cst_26 : f32 to vector<8x8xf32>
    %50 = arith.select %20, %48, %49 : vector<8x8xi1>, vector<8x8xf32>
    %cst_27 = arith.constant 0x7FC00000 : f32
    %51 = vector.broadcast %cst_27 : f32 to vector<8x8xf32>
    %52 = arith.select %21, %51, %50 : vector<8x8xi1>, vector<8x8xf32>
    %c1 = arith.constant 1 : index
    %c0_28 = arith.constant 0 : index
    %c0_29 = arith.constant 0 : index
    %53 = vector.load %arg6[%c1, %c0_28, %c0_29] : memref<2x8x8xf32, #tpu.memory_space<vmem>>, vector<1x8x8xf32>
    %54 = vector.shape_cast %53 : vector<1x8x8xf32> to vector<8x8xf32>
    %55 = vector.shape_cast %52 : vector<8x8xf32> to vector<1x8x8xf32>
    tpu.vector_store %arg6[%c1, %c0_28, %c0_29], %55 {strides = array<i32>} : memref<2x8x8xf32, #tpu.memory_space<vmem>>, vector<1x8x8xf32>,
    return
  }
}

</mosaic_0001>

<bundles_post_ra>
// kernel: repn_score_matrix.1
= control target key start
LH: loop header
LB: loop body
LE: loop exit
PB: predicated region body
PF: predicated region fallthrough
CT: control target
= control target key end

     0   :  { %vm54_vm0 = vcmask 1042432   ;;  %vm47_vm1 = vcmask 744448   ;;  %s676_s0 = inlined_call_operand.vmem [shape: f32[16,91], index: 0, kind: input, shape index: {}]   ;;  %s677_s1 = inlined_call_operand.vmem [shape: f32[16,128], index: 1, kind: input, shape index: {}]   ;;  %s678_s2 = inlined_call_operand.vmem [shape: f32[91,64], index: 2, kind: input, shape index: {}]   ;;  %s679_s3 = inlined_call_operand.vmem [shape: f32[1,64], index: 3, kind: input, shape index: {}]   ;;  %s680_s4 = inlined_call_operand.vmem [shape: f32[64,256], index: 4, kind: input, shape index: {}]   ;;  %s681_s5 = inlined_call_operand.vmem [shape: f32[1,256], index: 5, kind: input, shape index: {}]   ;;  %s682_s6 = inlined_call_operand.hbm [shape: f32[2,8,8], index: 6, kind: output, shape index: {}]  }
   0x1   :  { %v39_v0 = vld [vmem:[%s678_s2 + $0x58] sm:$0x7]  ;;  %v38_v1 = vld [vmem:[%s678_s2 + $0x50] sm:$0xff]  ;;  %v37_v2 = vld [vmem:[%s678_s2 + $0x48] sm:$0xff] }
   0x2   :  { %457 = vmatprep.subr.msk.mxu0 %vm54_vm0, %v39_v0  ;;  %v36_v3 = vld [vmem:[%s678_s2 + $0x40] sm:$0xff]  ;;  %v150_v5 = vld [vmem:[%s680_s4 + $0x78] sm:$0xff]  ;;  %v149_v6 = vld [vmem:[%s680_s4 + $0x70] sm:$0xff] }
   0x3   :  { %458 = vmatpush3.msk.msra.mxu0 %vm54_vm0, %v39_v0  ;;  %v24_v4 = vld [vmem:[%s676_s0] sm:$0xff]  ;;  %v148_v7 = vld [vmem:[%s680_s4 + $0x68] sm:$0xff]  ;;  %v35_v8 = vld [vmem:[%s678_s2 + $0x38] sm:$0xff]  ;;  %186 = vmatprep.subr.mxu1 %v150_v5 }
   0x4   :  { %459 = vmatprep.subr.mxu0 %v38_v1  ;;  %481 = vmatprep.mubr.msk.f32.mxu0 %vm47_vm1, %v24_v4  ;;  %v147_v9 = vld [vmem:[%s680_s4 + $0x60] sm:$0xff]  ;;  %v146_v10 = vld [vmem:[%s680_s4 + $0x58] sm:$0xff] }
   0x5   :  { %460 = vmatpush3.msra.mxu0 %v38_v1  ;;  %187 = vmatpush1.msra.mxu1 %v149_v6 }
   0x6   :  { %461 = vmatprep.subr.mxu0 %v37_v2 }
   0x7   :  { %462 = vmatpush3.msra.mxu0 %v37_v2 }
   0x8   :  { %463 = vmatprep.subr.mxu0 %v36_v3 }
   0x9   :  { %11 = vsyncpa [#allocation3], 0  ;;  %464 = vmatpush3.msra.mxu0 %v36_v3  ;;  %v34_v11 = vld [vmem:[%s678_s2 + $0x30] sm:$0xff]  ;;  %188 = vmatprep.subr.mxu1 %v148_v7  ;;  %v144_v13 = vld [vmem:[%s680_s4 + $0x48] sm:$0xff]  ;;  %v529_v30 = vmov 0.0   ;;  %vm163_vm2 = vcmask 523264   ;;  %v153_v38 = vlaneseq }
   0xa   :  { %v145_v12 = vld [vmem:[%s680_s4 + $0x50] sm:$0xff]  ;;  %465 = vmatprep.subr.mxu0 %v35_v8  ;;  %189 = vmatpush1.msra.mxu1 %v147_v9  ;;  %v33_v14 = vld [vmem:[%s678_s2 + $0x28] sm:$0xff]  ;;  %v143_v15 = vld [vmem:[%s680_s4 + $0x40] sm:$0xff]  ;;  %vm530_vm3 = vmmov 0   ;;  %vm335_vm6 = vcmask 64512  }
   0xb   :  { %466 = vmatpush3.msra.mxu0 %v35_v8  ;;  %190 = vmatprep.subr.mxu1 %v146_v10  ;;  %v142_v16 = vld [vmem:[%s680_s4 + $0x38] sm:$0xff]  ;;  %v32_v17 = vld [vmem:[%s678_s2 + $0x20] sm:$0xff]  ;;  %v30_v19 = vld [vmem:[%s678_s2 + $0x10] sm:$0xff]  ;;  %v154_v39 = vshrl.u32 %v153_v38, 7  ;;  %v254_v7 = vand.u32 127, %v153_v38 }
   0xc   :  { %467 = vmatprep.subr.mxu0 %v34_v11  ;;  %191 = vmatpush1.msra.mxu1 %v145_v12  ;;  %v31_v18 = vld [vmem:[%s678_s2 + $0x18] sm:$0xff]  ;;  %v29_v20 = vld [vmem:[%s678_s2 + $0x8] sm:$0xff]  ;;  %v28_v21 = vld [vmem:[%s678_s2] sm:$0xff] }
   0xd   :  { %468 = vmatpush3.msra.mxu0 %v34_v11  ;;  %192 = vmatprep.subr.mxu1 %v144_v13  ;;  %v25_v22 = vld [vmem:[%s676_s0 + $0x8] sm:$0xff]  ;;  %v141_v23 = vld [vmem:[%s680_s4 + $0x30] sm:$0xff]  ;;  %v139_v25 = vld [vmem:[%s680_s4 + $0x20] sm:$0xff]  ;;  %v159_v40 = vsub.s32 1, %v154_v39  ;;  %v155_v41 = vsub.s32 0, %v154_v39  ;;  %vm255_vm4 = vcmp.lt.s32.totalorder %v154_v39, %v254_v7  ;;  %vm256_vm5 = vcmp.eq.s32.totalorder %v154_v39, %v254_v7 }
   0xe   :  { %469 = vmatprep.subr.mxu0 %v33_v14  ;;  %193 = vmatpush1.msra.mxu1 %v143_v15  ;;  %v140_v24 = vld [vmem:[%s680_s4 + $0x28] sm:$0xff]  ;;  %v138_v26 = vld [vmem:[%s680_s4 + $0x18] sm:$0xff]  ;;  %v137_v27 = vld [vmem:[%s680_s4 + $0x10] sm:$0xff] }
   0xf   :  { %470 = vmatpush3.msra.mxu0 %v33_v14  ;;  %194 = vmatprep.subr.mxu1 %v142_v16  ;;  %v136_v28 = vld [vmem:[%s680_s4 + $0x8] sm:$0xff]  ;;  %v135_v29 = vld [vmem:[%s680_s4] sm:$0xff] }
  0x10   :  { %471 = vmatprep.subr.mxu0 %v32_v17  ;;  %195 = vmatpush1.msra.mxu1 %v141_v23  ;;  %v433_v32 = vld [vmem:[%s679_s3] ss:$0 sm:$0xff]  ;;  %v27_v55 = vld [vmem:[%s677_s1 + $0x8] sm:$0xff] }
  0x11   :  { %472 = vmatpush3.msra.mxu0 %v32_v17  ;;  %196 = vmatprep.subr.mxu1 %v140_v24  ;;  %v151_v42 = vld [vmem:[%s681_s5] sm:$0x3] }
  0x12   :  { %473 = vmatprep.subr.mxu0 %v31_v18  ;;  %197 = vmatpush1.msra.mxu1 %v139_v25  ;;  %v160_v43 = vrot.slane %v151_v42, %v159_v40  ;;  %v156_v44 = vrot.slane %v151_v42, %v155_v41  ;;  %v26_v48 = vld [vmem:[%s677_s1] sm:$0xff]  ;;  %s531_s1 = smov [#allocation2]  }
  0x13   :  { %474 = vmatpush3.msra.mxu0 %v31_v18  ;;  %198 = vmatprep.subr.mxu1 %v138_v26  ;;  %s422_s5 = sshll.u32 %s531_s1, 4  ;;  %s423_s5 = int_to_ptr.vmem [resolvable:$true] %s422_s5 }
  0x14   :  { %475 = vmatprep.subr.mxu0 %v30_v19  ;;  %199 = vmatpush1.msra.mxu1 %v137_v27  ;;  %s507_s13 = scalar_lea.vmem %s423_s5, 256  ;;  %p512_p1 = scmp.lt.s32.totalorder %s423_s5, %s423_s5 }
  0x15   :  { %476 = vmatpush3.msra.mxu0 %v30_v19  ;;  %200 = vmatprep.subr.mxu1 %v136_v28  ;;  %p508_p0 = scmp.ne.s32.totalorder %s423_s5, %s507_s13  ;;  %p513_p2 = scmp.lt.s32.totalorder %s507_s13, %s507_s13 }
  0x16   :  { %477 = vmatprep.subr.mxu0 %v29_v20  ;;  %201 = vmatpush1.msra.mxu1 %v135_v29 }
  0x17   :  { %478 = vmatpush3.msra.mxu0 %v29_v20  ;;  %234 = vmatprep.mubr.f32.mxu1 %v529_v30  ;;  %p514_p3 = por %p513_p2, %p512_p1 }
  0x18   :  { %479 = vmatprep.subr.mxu0 %v28_v21  ;;  %484 = vmatprep.subr.mxu1 %v529_v30 }
  0x19   :  { %480 = vmatpush3.msra.mxu0 %v28_v21  ;;  %p515_p4 = pnand %p514_p3, %p508_p0 }
  0x1a   :  { %482 = vmatmul.mubr.msk.f32.vlgmr.msra.gmra.mxu0 %vm47_vm1, %v25_v22  ;;  %489 = vmatprep.subr.mxu0 %v529_v30 }
  0x1b   :  { %491 = vmatprep.mubr.msk.f32.mxu0 %vm530_vm3, %v529_v30 }
  0xda   :  { %v483_v31 = vpop.f32.mrf.mxu0 }
  0xdb   :  { %v130_v35 = vadd.f32 %v483_v31, %v433_v32 }
  0xdc   :  { %v124_v33 = vpop.f32.mrf.mxu0 }
  0xdd   :  { %v125_v34 = vadd.f32 %v433_v32, %v124_v33  ;;  %v134_v37 = vmax.f32 %v130_v35, 0.0 }
  0xdf   :  { %v133_v36 = vmax.f32 %v125_v34, 0.0 }
  0xe1   :  { %437 = vmatmul.mubr.msk.f32.vlgmr.msra.gmra.mxu1 %vm163_vm2, %v133_v36 }
  0xe2   :  { %240 = vmatprep.mubr.f32.mxu1 %v529_v30 }
  0xe5   :  { %438 = vmatmul.mubr.msk.f32.gmra.mxu1 %vm163_vm2, %v134_v37 }
  0xe6   :  { %486 = vmatprep.mubr.msk.f32.mxu1 %vm530_vm3, %v529_v30 }
 0x1a1   :  { %v236_v45 = vpop.f32.mrf.mxu1 }
 0x1a2   :  { %v237_v49 = vadd.f32 %v236_v45, %v156_v44 }
 0x1a3   :  { %v238_v46 = vpop.f32.mrf.mxu1 }
 0x1a4   :  { %v239_v47 = vadd.f32 %v238_v46, %v160_v43  ;;  %v247_v54 = vmul.f32 %v237_v49, %v26_v48 }
 0x1a5   :  { %v242_v50 = vpop.f32.mrf.mxu1 }
 0x1a6   :  { %v249_v51 = vmul.f32 %v239_v47, %v26_v48  ;;  %v243_v56 = vadd.f32 %v242_v50, %v156_v44 }
 0x1a7   :  { %v244_v52 = vpop.f32.mrf.mxu1 }
 0x1a8   :  { %v245_v53 = vadd.f32 %v244_v52, %v160_v43  ;;  %485 = vmatpush3.xpose.msra.mxu1 %v249_v51  ;;  %v248_v58 = vmul.f32 %v243_v56, %v27_v55 }
 0x1aa   :  { %v250_v57 = vmul.f32 %v245_v53, %v27_v55 }
 0x1ab   :  { %487 = vmatmul.mubr.f32.vlgmr.msra.gmra.mxu1 %v247_v54 }
 0x1ac   :  { %490 = vmatpush3.xpose.msra.mxu0 %v250_v57 }
 0x1af   :  { %492 = vmatmul.mubr.f32.vlgmr.msra.gmra.mxu0 %v248_v58 }
 0x26b   :  { %v323_v59 = vpop.f32.mrf.mxu1 }
 0x26c   :  { %v327_v60 = vsub.f32 0.0, %v323_v59 }
 0x26d   :  { %v488_v61 = vpop.f32.mrf.mxu1 }
 0x26e   :  { %v328_v62 = vmul.f32 1.442695, %v327_v60 }
 0x26f   :  { %v403_v63 = vpop.f32.mrf.mxu0 }
 0x270   :  { %499 = vpow2.f32 %v328_v62  ;;  %v407_v0 = vsub.f32 0.0, %v403_v63 }
 0x271   :  { %v493_v1 = vpop.f32.mrf.mxu0 }
 0x272   :  { %v408_v2 = vmul.f32 1.442695, %v407_v0 }
 0x274   :  { %501 = vpow2.f32 %v408_v2 }
 0x27d   :  { %v500_v3 = vpop.eup %499 }
 0x27e   :  { %v330_v4 = vadd.f32 1.0, %v500_v3 }
 0x280   :  { %503 = vrcp.f32 %v330_v4 }
 0x281   :  { %v502_v5 = vpop.eup %501 }
 0x282   :  { %v410_v6 = vadd.f32 1.0, %v502_v5 }
 0x284   :  { %505 = vrcp.f32 %v410_v6 }
 0x28d   :  { %v504_v8 = vpop.eup %503 }
 0x28e   :  { %v333_v9 = vsel %vm255_vm4, %v504_v8, 0.5 }
 0x28f   :  { %v334_v10 = vsel %vm256_vm5, nan, %v333_v9 }
 0x290   :  { %336 = vst.msk [vmem:[#allocation2] sm:$0xff] %vm335_vm6, %v334_v10 }
 0x291   :  { %v506_v11 = vpop.eup %505 }
 0x292   :  { %v413_v12 = vsel %vm255_vm4, %v506_v11, 0.5 }
 0x293   :  { %v414_v13 = vsel %vm256_vm5, nan, %v413_v12 }
 0x294   :  { %416 = vst.msk [vmem:[#allocation2 + $0x8] sm:$0xff] %vm335_vm6, %v414_v13 }
 0x295   :  { %518 = shalt.err (!%p515_p4)
}
 0x296   :  { %s532_s14 = smov 128   ;;  %s533_s15 = smov 8  }
 0x297   :  { %428 = dma.vmem_to_hbm [thread:$0]  %s423_s5, 256, %s682_s6, [#allocation3], %s532_s14, %s532_s14, %s533_s15  }
 0x298   :  { %527 = dma.done.wait [#allocation3], 256  }
 0x299   :  { %528 = vsyncadd [#allocation3], 4294967040 }
 0x29a   :  { %432 = vsyncpa [#allocation3], 1 }

</bundles_post_ra>
